<compile_context>
chip_gen: v7x
topology: tpu7x:2x2x1
jax: 0.10.0
libtpu: 0.0.40
codegen_flags: <defaults>
</compile_context>

<pallas_src>
import functools

import jax
import jax.numpy as jnp
import numpy as np
from jax import lax
from jax.experimental import pallas as pl
from jax.experimental.pallas import tpu as pltpu


def mha_kernel(x_ref, wqkv_ref, bqkv_ref, wp_ref, bp_ref, o_ref, head_out,
               *, num_heads, emb_size):
    """One batch element per grid step: full (N, E) token slab in VMEM."""
    D = emb_size // num_heads
    inv_scaling = 1.0 / (emb_size ** 0.5)      # module scales by sqrt(emb_size)

    x = x_ref[0]                               # (N, E) bf16

    # ---- Fused QKV projection: one big MXU op, bias added once (f32 acc). ----
    qkv = jnp.dot(x, wqkv_ref[...],
                  preferred_element_type=jnp.float32) + bqkv_ref[...]   # (N, 3E) f32

    # Pre-scale queries once in f32, then cast Q/K/V to bf16 a single time.
    q_all = (qkv[:, :emb_size] * inv_scaling).astype(jnp.bfloat16)      # (N, E)
    k_all = qkv[:, emb_size:2 * emb_size].astype(jnp.bfloat16)          # (N, E)
    v_all = qkv[:, 2 * emb_size:].astype(jnp.bfloat16)                  # (N, E)

    # ---- Per-head attention (static unrolled loop; head count is small). ----
    for h in range(num_heads):
        q_h = q_all[:, h * D:(h + 1) * D]                    # (N, D) bf16 (scaled)
        k_h = k_all[:, h * D:(h + 1) * D]                    # (N, D) bf16
        v_h = v_all[:, h * D:(h + 1) * D]                    # (N, D) bf16

        # scores: contract last dims (no materialized transpose), bf16 MXU.
        energy = lax.dot_general(
            q_h, k_h, (((1,), (1,)), ((), ())),
            preferred_element_type=jnp.float32)              # (N, N) f32

        # softmax over keys, f32 throughout; reciprocal on the EUP.
        m = jnp.max(energy, axis=-1, keepdims=True)
        e = jnp.exp(energy - m)
        att = e * pl.reciprocal(jnp.sum(e, axis=-1, keepdims=True), approx=True)

        # head output written straight into the bf16 (N, E) scratch slice:
        # no concatenate, no H live head outputs, no full-slab cast later.
        head_out[:, pl.ds(h * D, D)] = jnp.dot(
            att.astype(jnp.bfloat16), v_h,
            preferred_element_type=jnp.float32).astype(jnp.bfloat16)

    # ---- Output projection: single full-width (N,E)x(E,E) matmul. ----
    proj = jnp.dot(head_out[...], wp_ref[...],
                   preferred_element_type=jnp.float32) + bp_ref[...]
    o_ref[0] = proj.astype(o_ref.dtype)


def multi_head_attention(x, params, *, num_heads):
    """x: (B, N, E) float32. params: dict of transposed weights + biases."""
    B, N, E = x.shape
    out_dtype = x.dtype

    # Fuse Q/K/V weights -> (E, 3E), biases -> (1, 3E); cast weights to bf16
    # for the MXU (halves weight HBM/VMEM traffic); biases stay f32.
    wqkv = jnp.concatenate(
        [params["wq_t"], params["wk_t"], params["wv_t"]], axis=1
    ).astype(jnp.bfloat16)                                        # (E, 3E)
    bqkv = jnp.concatenate(
        [params["bq"], params["bk"], params["bv"]], axis=0
    ).reshape(1, 3 * E).astype(jnp.float32)                       # (1, 3E)
    wp = params["wp_t"].astype(jnp.bfloat16)                      # (E, E)
    bp = params["bp"].reshape(1, E).astype(jnp.float32)           # (1, E)

    x_bf = x.astype(jnp.bfloat16)

    kernel = functools.partial(mha_kernel, num_heads=num_heads, emb_size=E)

    return pl.pallas_call(
        kernel,
        out_shape=jax.ShapeDtypeStruct((B, N, E), out_dtype),
        grid_spec=pltpu.PrefetchScalarGridSpec(
            num_scalar_prefetch=0,
            grid=(B,),
            in_specs=[
                pl.BlockSpec((1, N, E), lambda b: (b, 0, 0)),      # x
                pl.BlockSpec((E, 3 * E), lambda b: (0, 0)),        # fused QKV W
                pl.BlockSpec((1, 3 * E), lambda b: (0, 0)),        # fused QKV b
                pl.BlockSpec((E, E), lambda b: (0, 0)),            # proj W
                pl.BlockSpec((1, E), lambda b: (0, 0)),            # proj b
            ],
            out_specs=pl.BlockSpec((1, N, E), lambda b: (b, 0, 0)),
            scratch_shapes=[pltpu.VMEM((N, E), jnp.bfloat16)],     # head outputs
        ),
        compiler_params=pltpu.CompilerParams(
            dimension_semantics=("parallel",)),
    )(x_bf, wqkv, bqkv, wp, bp)


def init_params(key, emb_size):
    """Deterministic init mimicking nn.Linear default (uniform +/- 1/sqrt(fan_in))."""
    bound = 1.0 / np.sqrt(emb_size)
    keys = jax.random.split(key, 8)

    def u(k, shape):
        return jax.random.uniform(k, shape, jnp.float32, -bound, bound)

    # Weights stored already transposed: (in, out) so y = x @ W_T + b.
    return {
        "wq_t": u(keys[0], (emb_size, emb_size)), "bq": u(keys[1], (emb_size,)),
        "wk_t": u(keys[2], (emb_size, emb_size)), "bk": u(keys[3], (emb_size,)),
        "wv_t": u(keys[4], (emb_size, emb_size)), "bv": u(keys[5], (emb_size,)),
        "wp_t": u(keys[6], (emb_size, emb_size)), "bp": u(keys[7], (emb_size,)),
    }


def reference_mha(x, params, *, num_heads):
    """Pure-JAX f32 reference matching the PyTorch forward (eval mode, no mask)."""
    B, N, E = x.shape
    D = E // num_heads
    q = x @ params["wq_t"] + params["bq"]
    k = x @ params["wk_t"] + params["bk"]
    v = x @ params["wv_t"] + params["bv"]

    def split(t):  # b n (h d) -> b h n d
        return t.reshape(B, N, num_heads, D).transpose(0, 2, 1, 3)

    q, k, v = split(q), split(k), split(v)
    energy = jnp.einsum("bhqd,bhkd->bhqk", q, k)
    att = jax.nn.softmax(energy / (E ** 0.5), axis=-1)
    out = jnp.einsum("bhal,bhlv->bhav", att, v)
    out = out.transpose(0, 2, 1, 3).reshape(B, N, E)
    return out @ params["wp_t"] + params["bp"]


if __name__ == "__main__":
    B, N, E, H = 2, 8, 32, 4
    key = jax.random.PRNGKey(0)
    kx, kp = jax.random.split(key)
    x = jax.random.normal(kx, (B, N, E), jnp.float32)
    params = init_params(kp, E)

    out = multi_head_attention(x, params, num_heads=H)
    out = jax.block_until_ready(out)

    ref = reference_mha(x, params, num_heads=H)
    # bf16 MXU operands + approx reciprocal -> relaxed tolerance vs f32 reference.
    np.testing.assert_allclose(np.asarray(out, dtype=np.float32),
                               np.asarray(ref, dtype=np.float32),
                               rtol=5e-2, atol=5e-2)
    print("KERNEL_OK")
</pallas_src>

<mosaic_0001>
module attributes {stable_mosaic.version = 11 : i64} {
  func.func @mha_kernel(%arg0: i32, %arg1: memref<1x8x32xbf16, #tpu.memory_space<vmem>>, %arg2: memref<32x96xbf16, #tpu.memory_space<vmem>>, %arg3: memref<1x96xf32, #tpu.memory_space<vmem>>, %arg4: memref<32x32xbf16, #tpu.memory_space<vmem>>, %arg5: memref<1x32xf32, #tpu.memory_space<vmem>>, %arg6: memref<1x8x32xf32, #tpu.memory_space<vmem>>, %arg7: memref<8x32xbf16, #tpu.memory_space<vmem>>) attributes {dimension_semantics = [#tpu.dimension_semantics<parallel>], iteration_bounds = array<i64: 2>, scalar_prefetch = 0 : i64, scratch_operands = 1 : i64, tpu.core_type = #tpu.core_type<tc>, window_params = [{transform_indices = @transform_0, window_bounds = array<i64: 1, 8, 32>}, {pipeline_mode = #tpu.pipeline_mode<synchronous>, transform_indices = @transform_1, window_bounds = array<i64: 32, 96>}, {pipeline_mode = #tpu.pipeline_mode<synchronous>, transform_indices = @transform_2, window_bounds = array<i64: 1, 96>}, {pipeline_mode = #tpu.pipeline_mode<synchronous>, transform_indices = @transform_3, window_bounds = array<i64: 32, 32>}, {pipeline_mode = #tpu.pipeline_mode<synchronous>, transform_indices = @transform_4, window_bounds = array<i64: 1, 32>}, {transform_indices = @transform_5, window_bounds = array<i64: 1, 8, 32>}]} {
    %c0 = arith.constant 0 : index
    %c0_0 = arith.constant 0 : index
    %c0_1 = arith.constant 0 : index
    %0 = vector.load %arg1[%c0, %c0_0, %c0_1] : memref<1x8x32xbf16, #tpu.memory_space<vmem>>, vector<1x8x32xbf16>
    %1 = vector.shape_cast %0 : vector<1x8x32xbf16> to vector<8x32xbf16>
    %c0_2 = arith.constant 0 : index
    %c0_3 = arith.constant 0 : index
    %2 = vector.load %arg2[%c0_2, %c0_3] : memref<32x96xbf16, #tpu.memory_space<vmem>>, vector<32x96xbf16>
    %cst = arith.constant dense<0.000000e+00> : vector<8x96xf32>
    %3 = tpu.matmul %1, %2, %cst {dimension_numbers = #tpu.dot_dimension_numbers<[1], [0], [0], [1], [0, 0, 1, 1], [], []>} : vector<8x32xbf16>, vector<32x96xbf16>, vector<8x96xf32> -> vector<8x96xf32>
    %c0_4 = arith.constant 0 : index
    %c0_5 = arith.constant 0 : index
    %4 = vector.load %arg3[%c0_4, %c0_5] : memref<1x96xf32, #tpu.memory_space<vmem>>, vector<1x96xf32>
    %5 = vector.broadcast %4 : vector<1x96xf32> to vector<8x96xf32>
    %6 = arith.addf %3, %5 : vector<8x96xf32>
    %7 = vector.extract_strided_slice %6 {offsets = [0, 0], sizes = [8, 32], strides = [1, 1]} : vector<8x96xf32> to vector<8x32xf32>
    %cst_6 = arith.constant 0.176776692 : f32
    %8 = vector.broadcast %cst_6 : f32 to vector<8x32xf32>
    %9 = arith.mulf %7, %8 : vector<8x32xf32>
    %10 = arith.truncf %9 : vector<8x32xf32> to vector<8x32xbf16>
    %11 = vector.extract_strided_slice %6 {offsets = [0, 32], sizes = [8, 32], strides = [1, 1]} : vector<8x96xf32> to vector<8x32xf32>
    %12 = arith.truncf %11 : vector<8x32xf32> to vector<8x32xbf16>
    %13 = vector.extract_strided_slice %6 {offsets = [0, 64], sizes = [8, 32], strides = [1, 1]} : vector<8x96xf32> to vector<8x32xf32>
    %14 = arith.truncf %13 : vector<8x32xf32> to vector<8x32xbf16>
    %15 = vector.extract_strided_slice %10 {offsets = [0, 0], sizes = [8, 8], strides = [1, 1]} : vector<8x32xbf16> to vector<8x8xbf16>
    %16 = vector.extract_strided_slice %12 {offsets = [0, 0], sizes = [8, 8], strides = [1, 1]} : vector<8x32xbf16> to vector<8x8xbf16>
    %17 = vector.extract_strided_slice %14 {offsets = [0, 0], sizes = [8, 8], strides = [1, 1]} : vector<8x32xbf16> to vector<8x8xbf16>
    %cst_7 = arith.constant dense<0.000000e+00> : vector<8x8xf32>
    %18 = tpu.matmul %15, %16, %cst_7 {dimension_numbers = #tpu.dot_dimension_numbers<[1], [1], [0], [0], [0, 0, 1, 0], [], []>} : vector<8x8xbf16>, vector<8x8xbf16>, vector<8x8xf32> -> vector<8x8xf32>
    %cst_8 = arith.constant dense<0xFF800000> : vector<8xf32>
    %19 = vector.multi_reduction <maximumf>, %18, %cst_8 [1] : vector<8x8xf32> to vector<8xf32>
    %20 = vector.shape_cast %19 : vector<8xf32> to vector<8x1xf32>
    %21 = vector.broadcast %20 : vector<8x1xf32> to vector<8x8xf32>
    %22 = arith.subf %18, %21 : vector<8x8xf32>
    %23 = math.exp %22 : vector<8x8xf32>
    %cst_9 = arith.constant dense<0.000000e+00> : vector<8xf32>
    %24 = vector.multi_reduction <add>, %23, %cst_9 [1] : vector<8x8xf32> to vector<8xf32>
    %25 = vector.shape_cast %24 : vector<8xf32> to vector<8x1xf32>
    %26 = tpu.reciprocal %25 {approx = true} : vector<8x1xf32> -> vector<8x1xf32>
    %27 = vector.broadcast %26 : vector<8x1xf32> to vector<8x8xf32>
    %28 = arith.mulf %23, %27 : vector<8x8xf32>
    %29 = arith.truncf %28 : vector<8x8xf32> to vector<8x8xbf16>
    %cst_10 = arith.constant dense<0.000000e+00> : vector<8x8xf32>
    %30 = tpu.matmul %29, %17, %cst_10 {dimension_numbers = #tpu.dot_dimension_numbers<[1], [0], [0], [1], [0, 0, 1, 1], [], []>} : vector<8x8xbf16>, vector<8x8xbf16>, vector<8x8xf32> -> vector<8x8xf32>
    %31 = arith.truncf %30 : vector<8x8xf32> to vector<8x8xbf16>
    %c0_11 = arith.constant 0 : index
    %c0_12 = arith.constant 0 : index
    %32 = vector.load %arg7[%c0_11, %c0_12] : memref<8x32xbf16, #tpu.memory_space<vmem>>, vector<8x8xbf16>
    tpu.vector_store %arg7[%c0_11, %c0_12], %31 {strides = array<i32>} : memref<8x32xbf16, #tpu.memory_space<vmem>>, vector<8x8xbf16>,
    %33 = vector.extract_strided_slice %10 {offsets = [0, 8], sizes = [8, 8], strides = [1, 1]} : vector<8x32xbf16> to vector<8x8xbf16>
    %34 = vector.extract_strided_slice %12 {offsets = [0, 8], sizes = [8, 8], strides = [1, 1]} : vector<8x32xbf16> to vector<8x8xbf16>
    %35 = vector.extract_strided_slice %14 {offsets = [0, 8], sizes = [8, 8], strides = [1, 1]} : vector<8x32xbf16> to vector<8x8xbf16>
    %cst_13 = arith.constant dense<0.000000e+00> : vector<8x8xf32>
    %36 = tpu.matmul %33, %34, %cst_13 {dimension_numbers = #tpu.dot_dimension_numbers<[1], [1], [0], [0], [0, 0, 1, 0], [], []>} : vector<8x8xbf16>, vector<8x8xbf16>, vector<8x8xf32> -> vector<8x8xf32>
    %cst_14 = arith.constant dense<0xFF800000> : vector<8xf32>
    %37 = vector.multi_reduction <maximumf>, %36, %cst_14 [1] : vector<8x8xf32> to vector<8xf32>
    %38 = vector.shape_cast %37 : vector<8xf32> to vector<8x1xf32>
    %39 = vector.broadcast %38 : vector<8x1xf32> to vector<8x8xf32>
    %40 = arith.subf %36, %39 : vector<8x8xf32>
    %41 = math.exp %40 : vector<8x8xf32>
    %cst_15 = arith.constant dense<0.000000e+00> : vector<8xf32>
    %42 = vector.multi_reduction <add>, %41, %cst_15 [1] : vector<8x8xf32> to vector<8xf32>
    %43 = vector.shape_cast %42 : vector<8xf32> to vector<8x1xf32>
    %44 = tpu.reciprocal %43 {approx = true} : vector<8x1xf32> -> vector<8x1xf32>
    %45 = vector.broadcast %44 : vector<8x1xf32> to vector<8x8xf32>
    %46 = arith.mulf %41, %45 : vector<8x8xf32>
    %47 = arith.truncf %46 : vector<8x8xf32> to vector<8x8xbf16>
    %cst_16 = arith.constant dense<0.000000e+00> : vector<8x8xf32>
    %48 = tpu.matmul %47, %35, %cst_16 {dimension_numbers = #tpu.dot_dimension_numbers<[1], [0], [0], [1], [0, 0, 1, 1], [], []>} : vector<8x8xbf16>, vector<8x8xbf16>, vector<8x8xf32> -> vector<8x8xf32>
    %49 = arith.truncf %48 : vector<8x8xf32> to vector<8x8xbf16>
    %c0_17 = arith.constant 0 : index
    %c8 = arith.constant 8 : index
    %50 = vector.load %arg7[%c0_17, %c8] : memref<8x32xbf16, #tpu.memory_space<vmem>>, vector<8x8xbf16>
    tpu.vector_store %arg7[%c0_17, %c8], %49 {strides = array<i32>} : memref<8x32xbf16, #tpu.memory_space<vmem>>, vector<8x8xbf16>,
    %51 = vector.extract_strided_slice %10 {offsets = [0, 16], sizes = [8, 8], strides = [1, 1]} : vector<8x32xbf16> to vector<8x8xbf16>
    %52 = vector.extract_strided_slice %12 {offsets = [0, 16], sizes = [8, 8], strides = [1, 1]} : vector<8x32xbf16> to vector<8x8xbf16>
    %53 = vector.extract_strided_slice %14 {offsets = [0, 16], sizes = [8, 8], strides = [1, 1]} : vector<8x32xbf16> to vector<8x8xbf16>
    %cst_18 = arith.constant dense<0.000000e+00> : vector<8x8xf32>
    %54 = tpu.matmul %51, %52, %cst_18 {dimension_numbers = #tpu.dot_dimension_numbers<[1], [1], [0], [0], [0, 0, 1, 0], [], []>} : vector<8x8xbf16>, vector<8x8xbf16>, vector<8x8xf32> -> vector<8x8xf32>
    %cst_19 = arith.constant dense<0xFF800000> : vector<8xf32>
    %55 = vector.multi_reduction <maximumf>, %54, %cst_19 [1] : vector<8x8xf32> to vector<8xf32>
    %56 = vector.shape_cast %55 : vector<8xf32> to vector<8x1xf32>
    %57 = vector.broadcast %56 : vector<8x1xf32> to vector<8x8xf32>
    %58 = arith.subf %54, %57 : vector<8x8xf32>
    %59 = math.exp %58 : vector<8x8xf32>
    %cst_20 = arith.constant dense<0.000000e+00> : vector<8xf32>
    %60 = vector.multi_reduction <add>, %59, %cst_20 [1] : vector<8x8xf32> to vector<8xf32>
    %61 = vector.shape_cast %60 : vector<8xf32> to vector<8x1xf32>
    %62 = tpu.reciprocal %61 {approx = true} : vector<8x1xf32> -> vector<8x1xf32>
    %63 = vector.broadcast %62 : vector<8x1xf32> to vector<8x8xf32>
    %64 = arith.mulf %59, %63 : vector<8x8xf32>
    %65 = arith.truncf %64 : vector<8x8xf32> to vector<8x8xbf16>
    %cst_21 = arith.constant dense<0.000000e+00> : vector<8x8xf32>
    %66 = tpu.matmul %65, %53, %cst_21 {dimension_numbers = #tpu.dot_dimension_numbers<[1], [0], [0], [1], [0, 0, 1, 1], [], []>} : vector<8x8xbf16>, vector<8x8xbf16>, vector<8x8xf32> -> vector<8x8xf32>
    %67 = arith.truncf %66 : vector<8x8xf32> to vector<8x8xbf16>
    %c0_22 = arith.constant 0 : index
    %c16 = arith.constant 16 : index
    %68 = vector.load %arg7[%c0_22, %c16] : memref<8x32xbf16, #tpu.memory_space<vmem>>, vector<8x8xbf16>
    tpu.vector_store %arg7[%c0_22, %c16], %67 {strides = array<i32>} : memref<8x32xbf16, #tpu.memory_space<vmem>>, vector<8x8xbf16>,
    %69 = vector.extract_strided_slice %10 {offsets = [0, 24], sizes = [8, 8], strides = [1, 1]} : vector<8x32xbf16> to vector<8x8xbf16>
    %70 = vector.extract_strided_slice %12 {offsets = [0, 24], sizes = [8, 8], strides = [1, 1]} : vector<8x32xbf16> to vector<8x8xbf16>
    %71 = vector.extract_strided_slice %14 {offsets = [0, 24], sizes = [8, 8], strides = [1, 1]} : vector<8x32xbf16> to vector<8x8xbf16>
    %cst_23 = arith.constant dense<0.000000e+00> : vector<8x8xf32>
    %72 = tpu.matmul %69, %70, %cst_23 {dimension_numbers = #tpu.dot_dimension_numbers<[1], [1], [0], [0], [0, 0, 1, 0], [], []>} : vector<8x8xbf16>, vector<8x8xbf16>, vector<8x8xf32> -> vector<8x8xf32>
    %cst_24 = arith.constant dense<0xFF800000> : vector<8xf32>
    %73 = vector.multi_reduction <maximumf>, %72, %cst_24 [1] : vector<8x8xf32> to vector<8xf32>
    %74 = vector.shape_cast %73 : vector<8xf32> to vector<8x1xf32>
    %75 = vector.broadcast %74 : vector<8x1xf32> to vector<8x8xf32>
    %76 = arith.subf %72, %75 : vector<8x8xf32>
    %77 = math.exp %76 : vector<8x8xf32>
    %cst_25 = arith.constant dense<0.000000e+00> : vector<8xf32>
    %78 = vector.multi_reduction <add>, %77, %cst_25 [1] : vector<8x8xf32> to vector<8xf32>
    %79 = vector.shape_cast %78 : vector<8xf32> to vector<8x1xf32>
    %80 = tpu.reciprocal %79 {approx = true} : vector<8x1xf32> -> vector<8x1xf32>
    %81 = vector.broadcast %80 : vector<8x1xf32> to vector<8x8xf32>
    %82 = arith.mulf %77, %81 : vector<8x8xf32>
    %83 = arith.truncf %82 : vector<8x8xf32> to vector<8x8xbf16>
    %cst_26 = arith.constant dense<0.000000e+00> : vector<8x8xf32>
    %84 = tpu.matmul %83, %71, %cst_26 {dimension_numbers = #tpu.dot_dimension_numbers<[1], [0], [0], [1], [0, 0, 1, 1], [], []>} : vector<8x8xbf16>, vector<8x8xbf16>, vector<8x8xf32> -> vector<8x8xf32>
    %85 = arith.truncf %84 : vector<8x8xf32> to vector<8x8xbf16>
    %c0_27 = arith.constant 0 : index
    %c24 = arith.constant 24 : index
    %86 = vector.load %arg7[%c0_27, %c24] : memref<8x32xbf16, #tpu.memory_space<vmem>>, vector<8x8xbf16>
    tpu.vector_store %arg7[%c0_27, %c24], %85 {strides = array<i32>} : memref<8x32xbf16, #tpu.memory_space<vmem>>, vector<8x8xbf16>,
    %c0_28 = arith.constant 0 : index
    %c0_29 = arith.constant 0 : index
    %87 = vector.load %arg7[%c0_28, %c0_29] : memref<8x32xbf16, #tpu.memory_space<vmem>>, vector<8x32xbf16>
    %c0_30 = arith.constant 0 : index
    %c0_31 = arith.constant 0 : index
    %88 = vector.load %arg4[%c0_30, %c0_31] : memref<32x32xbf16, #tpu.memory_space<vmem>>, vector<32x32xbf16>
    %cst_32 = arith.constant dense<0.000000e+00> : vector<8x32xf32>
    %89 = tpu.matmul %87, %88, %cst_32 {dimension_numbers = #tpu.dot_dimension_numbers<[1], [0], [0], [1], [0, 0, 1, 1], [], []>} : vector<8x32xbf16>, vector<32x32xbf16>, vector<8x32xf32> -> vector<8x32xf32>
    %c0_33 = arith.constant 0 : index
    %c0_34 = arith.constant 0 : index
    %90 = vector.load %arg5[%c0_33, %c0_34] : memref<1x32xf32, #tpu.memory_space<vmem>>, vector<1x32xf32>
    %91 = vector.broadcast %90 : vector<1x32xf32> to vector<8x32xf32>
    %92 = arith.addf %89, %91 : vector<8x32xf32>
    %c0_35 = arith.constant 0 : index
    %c0_36 = arith.constant 0 : index
    %c0_37 = arith.constant 0 : index
    %93 = vector.load %arg6[%c0_35, %c0_36, %c0_37] : memref<1x8x32xf32, #tpu.memory_space<vmem>>, vector<1x8x32xf32>
    %94 = vector.shape_cast %93 : vector<1x8x32xf32> to vector<8x32xf32>
    %95 = vector.shape_cast %92 : vector<8x32xf32> to vector<1x8x32xf32>
    tpu.vector_store %arg6[%c0_35, %c0_36, %c0_37], %95 {strides = array<i32>} : memref<1x8x32xf32, #tpu.memory_space<vmem>>, vector<1x8x32xf32>,
    return
  }
  func.func @transform_0(%arg0: i32) -> (i32, i32, i32) {
    %c0_i32 = arith.constant 0 : i32
    %c0_i32_0 = arith.constant 0 : i32
    %c0_i32_1 = arith.constant 0 : i32
    return %arg0, %c0_i32, %c0_i32_0 : i32, i32, i32
  }
  func.func @transform_1(%arg0: i32) -> (i32, i32) {
    %c0_i32 = arith.constant 0 : i32
    %c0_i32_0 = arith.constant 0 : i32
    %c0_i32_1 = arith.constant 0 : i32
    return %c0_i32, %c0_i32_0 : i32, i32
  }
  func.func @transform_2(%arg0: i32) -> (i32, i32) {
    %c0_i32 = arith.constant 0 : i32
    %c0_i32_0 = arith.constant 0 : i32
    %c0_i32_1 = arith.constant 0 : i32
    return %c0_i32, %c0_i32_0 : i32, i32
  }
  func.func @transform_3(%arg0: i32) -> (i32, i32) {
    %c0_i32 = arith.constant 0 : i32
    %c0_i32_0 = arith.constant 0 : i32
    %c0_i32_1 = arith.constant 0 : i32
    return %c0_i32, %c0_i32_0 : i32, i32
  }
  func.func @transform_4(%arg0: i32) -> (i32, i32) {
    %c0_i32 = arith.constant 0 : i32
    %c0_i32_0 = arith.constant 0 : i32
    %c0_i32_1 = arith.constant 0 : i32
    return %c0_i32, %c0_i32_0 : i32, i32
  }
  func.func @transform_5(%arg0: i32) -> (i32, i32, i32) {
    %c0_i32 = arith.constant 0 : i32
    %c0_i32_0 = arith.constant 0 : i32
    %c0_i32_1 = arith.constant 0 : i32
    return %arg0, %c0_i32, %c0_i32_0 : i32, i32, i32
  }
}

</mosaic_0001>

<bundles_post_ra>
// kernel: tpu_custom_call.1
= control target key start
LH: loop header
LB: loop body
LE: loop exit
PB: predicated region body
PF: predicated region fallthrough
CT: control target
= control target key end

     0   :  { %10 = vsyncpa [#allocation4], 0  ;;  %s1728_s0 = inlined_call_operand.hbm [shape: bf16[2,8,32], index: 0, kind: input, shape index: {}]   ;;  %s1729_s1 = inlined_call_operand.hbm [shape: bf16[32,96], index: 1, kind: input, shape index: {}]   ;;  %s1730_s2 = inlined_call_operand.vmem [shape: f32[1,96], index: 2, kind: input, shape index: {}]   ;;  %s1731_s3 = inlined_call_operand.hbm [shape: bf16[32,32], index: 3, kind: input, shape index: {}]   ;;  %s1732_s4 = inlined_call_operand.vmem [shape: f32[1,32], index: 4, kind: input, shape index: {}]   ;;  %s1733_s5 = inlined_call_operand.hbm [shape: f32[2,8,32], index: 5, kind: output, shape index: {}]  }
   0x1   :  { %12 = vsyncpa [#allocation4 + $0x1], 0 }
   0x2   :  { %13 = vsyncpa [#allocation7], 0 }
   0x3   :  { %14 = vsyncpa [#allocation5], 0 }
   0x4   :  { %16 = vsyncpa [#allocation5 + $0x1], 0  ;;  %s1423_s18 = smov 0   ;;  %s1425_s19 = smov 0  }
   0x5   :  { %s1427_s20 = smov 0   ;;  %s1429_s21 = smov 0  }
   0x6 LB: > { %s1444_s22 = sadd.s32 4294967295, %s1369_s21   ;;  %s984_s23 = sadd.s32 4294967294, %s1369_s21   ;;  %s1369_s21 = sphi %s1429_s21, %s1753_s21   ;;  %s1365_s20 = sphi %s1427_s20, %s1752_s20   ;;  %s1361_s19 = sphi %s1425_s19, %s1751_s19   ;;  %s1357_s18 = sphi %s1423_s18, %s1750_s18  }
   0x7   : > { %p42_p0 = scmp.ne.s32.totalorder %s1361_s19, %s1357_s18  ;;  %p1734_p1 = scmp.eq.s32.totalorder %s1444_s22, 0 }
   0x8   : > { %p156_p3 = scmp.eq.s32.totalorder %s984_s23, 1  ;;  %p985_p5 = scmp.ge.s32.totalorder %s1369_s21, 1 }
   0x9   : > { %p1453_p4 = por %p1734_p1, %p42_p0  ;;  %p163_p7 = scmp.lt.s32.totalorder %s1369_s21, 3 }
   0xa   : > { %p1458_p6 = por %p156_p3, %p42_p0  ;;  %s1371_s27 = smov [#allocation6]  }
   0xb   : > { %s1737_s24 = scalar_select %p1453_p4, 1, 0 }
   0xc   : > { %s1738_s25 = scalar_select %p1458_p6, 1, 0 }
   0xd   : > { %p1463_p8 = pnand %p985_p5, %p163_p7  ;;  %s175_s28 = sshll.u32 %s1371_s27, 4  ;;  %s1467_s28 = int_to_ptr.vmem [resolvable:$true] %s175_s28 }
   0xe   : > { %s1372_s30 = smov [#allocation8]   ;;  %s1213_s9 = scalar_lea.hbm %s1729_s1, 256 }
   0xf   : > { %p1120_p9 = pneg %p1463_p8  ;;  %s191_s6 = sshll.u32 %s1372_s30, 4  ;;  %s1478_s6 = int_to_ptr.vmem [resolvable:$true] %s191_s6 }
  0x10   : > { %p1214_p12 = scmp.ne.s32.totalorder %s1729_s1, %s1213_s9  ;;  %p1220_p5 = scmp.lt.u32.totalorder %s1213_s9, %s1729_s1 }
  0x11   : > { %p1474_p11 = pnand %p1120_p9, %p1734_p1 }
  0x13   : > { %p1215_p13 = pneg %p1474_p11 }
  0x15   : > { %p1216_p0 = pnand %p1215_p13, %p1214_p12 }
  0x17   : > { %p1217_p3 = pneg %p1216_p0 }
  0x19   : > { %p1222_p7 = pnand %p1220_p5, %p1217_p3 }
  0x1b   : > { %1225 = shalt.err (!%p1222_p7)
}
  0x1c   : > { %s1226_s14 = scalar_lea.vmem %s1467_s28, 256  ;;  %p1234_p2 = scmp.lt.s32.totalorder %s1467_s28, %s1467_s28 }
  0x1d   : > { %p1227_p9 = scmp.ne.s32.totalorder %s1467_s28, %s1226_s14  ;;  %p1235_p12 = scmp.lt.s32.totalorder %s1226_s14, %s1226_s14 }
  0x1f   : > { %p1229_p10 = pnand %p1227_p9, %p1215_p13  ;;  %p1236_p0 = por %p1235_p12, %p1234_p2 }
  0x21   : > { %p1230_p1 = pneg %p1229_p10 }
  0x23   : > { %p1237_p6 = pnand %p1236_p0, %p1230_p1 }
  0x25   : > { %1240 = shalt.err (!%p1237_p6)
}
  0x26   : > { %s1373_s15 = smov 64   ;;  %s1374_s16 = smov 4  }
  0x27   : > { %1123 = dma.hbm_to_vmem [thread:$0]  (!%p1474_p11), %s1729_s1, 256, %s1467_s28, [#allocation7], %s1373_s15, %s1373_s15, %s1374_s16  }
  0x28   : > { %s1241_s7 = scalar_lea.hbm %s1731_s3, 256 }
  0x29   : > { %p1242_p2 = scmp.ne.s32.totalorder %s1731_s3, %s1241_s7  ;;  %p1248_p10 = scmp.lt.u32.totalorder %s1241_s7, %s1731_s3 }
  0x2b   : > { %p1244_p1 = pnand %p1242_p2, %p1215_p13 }
  0x2d   : > { %p1245_p6 = pneg %p1244_p1 }
  0x2f   : > { %p1250_p3 = pnand %p1248_p10, %p1245_p6 }
  0x31   : > { %1253 = shalt.err (!%p1250_p3)
}
  0x32   : > { %s1254_s28 = scalar_lea.vmem %s1478_s6, 256  ;;  %p1262_p12 = scmp.lt.s32.totalorder %s1478_s6, %s1478_s6 }
  0x33   : > { %p1255_p5 = scmp.ne.s32.totalorder %s1478_s6, %s1254_s28  ;;  %p1263_p0 = scmp.lt.s32.totalorder %s1254_s28, %s1254_s28 }
  0x35   : > { %p1257_p7 = pnand %p1255_p5, %p1215_p13  ;;  %p1264_p2 = por %p1263_p0, %p1262_p12 }
  0x37   : > { %p1258_p9 = pneg %p1257_p7 }
  0x39   : > { %p1265_p1 = pnand %p1264_p2, %p1258_p9 }
  0x3b   : > { %1268 = shalt.err (!%p1265_p1)
}
  0x3c   : > { %1126 = dma.hbm_to_vmem [thread:$0]  (!%p1474_p11), %s1731_s3, 256, %s1478_s6, [#allocation7], %s1373_s15, %s1373_s15, %s1374_s16  }
  0x3d   : > { %s1533_s14 = sadd.s32 1, %s1369_s21   ;;  %s29_s29 = sadd.s32 1, %s1365_s20 }
  0x3e   : > { %s26_s17 = ssub.s32 %s1369_s21, %s1533_s14  ;;  %p36_p13 = scmp.ne.s32.totalorder %s1365_s20, %s1361_s19 }
  0x3f   : > { %p27_p6 = scmp.eq.s32.totalorder %s26_s17, 0  ;;  %p37_p10 = scmp.eq.s32.totalorder %s1369_s21, 0 }
  0x40   : > { %p1741_p3 = scmp.eq.s32.totalorder %s1444_s22, 1  ;;  %p1137_p7 = scmp.lt.s32.totalorder %s1369_s21, 2 }
  0x41   : > { %s1549_s27 = scalar_select %p27_p6, %s1365_s20, %s29_s29  }
  0x42   : > { %p1543_p5 = por %p1741_p3, %p36_p13  ;;  %p38_p9 = por %p37_p10, %p36_p13 }
  0x43   : > { %s208_s30 = sand.u32 1, %s1365_s20   ;;  %s990_s6 = sshll.u32 %s1369_s21, 6 }
  0x44   : > { %s1742_s23 = scalar_select %p1543_p5, 1, 0 }
  0x45   : > { %s989_s7 = sshll.u32 %s208_s30, 2  ;;  %s1556_s8 = scalar_lea.hbm %s1728_s0, %s990_s6 }
  0x46   : > { %s212_s9 = scalar_lea.vmem [#allocation3], %s989_s7  ;;  %p1560_p11 = pnand %p1137_p7, %p38_p9 }
  0x47   : > { %s219_s10 = sshll.u32 %s212_s9, 4  ;;  %s209_s28 = scalar_lea.sflag [#allocation4], %s208_s30  ;;  %s1558_s10 = int_to_ptr.vmem [resolvable:$true] %s219_s10 }
  0x48   : > { %s1269_s12 = scalar_lea.hbm %s1556_s8, 64  ;;  %p1271_p0 = pneg %p1560_p11 }
  0x49   : > { %p1270_p12 = scmp.ne.s32.totalorder %s1556_s8, %s1269_s12  ;;  %s1274_s17 = scalar_lea.hbm %s1728_s0, 128 }
  0x4a   : > { %p1275_p13 = scmp.lt.u32.totalorder %s1556_s8, %s1728_s0  ;;  %p1276_p6 = scmp.lt.u32.totalorder %s1274_s17, %s1269_s12 }
  0x4b   : > { %p1272_p2 = pnand %p1271_p0, %p1270_p12  ;;  %p1278_p3 = scmp.lt.u32.totalorder %s1269_s12, %s1556_s8 }
  0x4c   : > { %p1277_p10 = por %p1276_p6, %p1275_p13 }
  0x4d   : > { %p1273_p1 = pneg %p1272_p2 }
  0x4e   : > { %p1279_p7 = por %p1278_p3, %p1277_p10 }
  0x50   : > { %p1280_p9 = pnand %p1279_p7, %p1273_p1 }
  0x52   : > { %1283 = shalt.err (!%p1280_p9)
}
  0x53   : > { %s1284_s30 = scalar_lea.vmem %s1558_s10, 64  ;;  %s1375_s15 = smov [#allocation3]  }
  0x54   : > { %p1285_p12 = scmp.ne.s32.totalorder %s1558_s10, %s1284_s30  ;;  %s1289_s16 = sshll.u32 %s1375_s15, 4  ;;  %s1290_s16 = int_to_ptr.vmem [resolvable:$false] %s1289_s16 }
  0x55   : > { %s1291_s9 = scalar_lea.vmem %s1290_s16, 128  ;;  %p1292_p4 = scmp.lt.s32.totalorder %s1558_s10, %s1290_s16 }
  0x56   : > { %p1287_p2 = pnand %p1285_p12, %p1271_p0  ;;  %p1293_p13 = scmp.lt.s32.totalorder %s1291_s9, %s1284_s30 }
  0x58   : > { %p1288_p5 = pneg %p1287_p2  ;;  %p1294_p6 = por %p1293_p13, %p1292_p4 }
  0x5a   : > { %p1295_p10 = pnand %p1294_p6, %p1288_p5 }
  0x5c   : > { %1298 = shalt.err (!%p1295_p10)
}
  0x5d   : > { %1130 = dma.hbm_to_vmem [thread:$0]  (!%p1560_p11), %s1556_s8, 64, %s1558_s10, %s209_s28  }
  0x5e   : > { %228 = sbr.rel (%p1463_p8) target bundleno = 1609 (0x649), region = 40  ;;  %s1592_s12 = sand.u32 (!%p1463_p8), 1, %s1361_s19  }
  0x5f   : > { %s992_s13 = sshll.u32 (!%p1463_p8), %s1592_s12, 2  ;;  %s231_s29 = scalar_lea.sflag (!%p1463_p8), [#allocation4], %s1592_s12 }
  0x60   : > { %s234_s17 = scalar_lea.vmem (!%p1463_p8), [#allocation3], %s992_s13  ;;  %p1744_p4 = scmp.ne.s32.totalorder (!%p1463_p8), %s1737_s24, 0 }
  0x65   : > { %1344 = dma.done.wait (%p1744_p4), %s231_s29, 64  }
  0x66   : > { %1346 = vsyncadd (%p1744_p4), %s231_s29, 4294967232  ;;  %p1745_p5 = scmp.eq.s32.totalorder %s1444_s22, 0 }
  0x68   : > { %1348 = dma.done.wait (%p1745_p5), [#allocation7], 512   ;;  %p1746_p11 = pmov %p1745_p5 }
  0x69   : > { %v1376_v0 = vmov 0.0   ;;  %vm1377_vm0 = vmmov 0   ;;  %v1193_v1 = vld [vmem:[#allocation6] sm:$0xff]   ;;  %v1194_v2 = vld [vmem:[#allocation6 + $0x8] sm:$0xff]   ;;  %v270_v3 = vld [vmem:[%s234_s17] sm:$0xf] }
  0x6a   : > { %1350 = vsyncadd (%p1746_p11), [#allocation7], 4294966784  ;;  %1044 = vmatprep.subr.bf16.mxu0 %v1376_v0  ;;  %1048 = vmatprep.mubr.msk.bf16.mxu0 %vm1377_vm0, %v1376_v0  ;;  %vm294_vm1 = vcmask 261120   ;;  %v996_v4 = vld [vmem:[%s1730_s2] ss:$0 sm:$0xff]  ;;  %s1378_s8 = smov 96  }
  0x6b   : > { %1052 = vmatprep.subr.bf16.mxu1 %v1376_v0  ;;  %1054 = vmatprep.mubr.msk.bf16.mxu1 %vm1377_vm0, %v1376_v0  ;;  %s1379_s10 = smov 120   ;;  %s1380_s11 = smov 88   ;;  %vm344_vm2 = vcmask 64512   ;;  %vm408_vm3 = vcmask 1043456   ;;  %vm453_vm4 = vcmask 60416   ;;  %vm573_vm5 = vcmask 126016  }
  0x6c   : > { %1045 = vmatpush3.bf16.msra.mxu0 %v1193_v1  ;;  %s1381_s28 = smov 80   ;;  %s1382_s7 = smov 112   ;;  %vm692_vm6 = vcmask 191616   ;;  %vm811_vm7 = vcmask 257216  }
  0x6d   : > { %1046 = vmatprep.subr.bf16.mxu0 %v1376_v0  ;;  %s1383_s6 = smov 72   ;;  %s1384_s30 = smov 104  }
  0x6e   : > { %s1385_s15 = smov 56   ;;  %s1386_s16 = smov 64  }
  0x6f   : > { %s1387_s9 = smov 40   ;;  %s1388_s13 = smov 48  }
  0x70   : > { %1047 = vmatpush3.bf16.msra.mxu0 %v1194_v2  ;;  %s1389_s29 = smov 8   ;;  %s1390_s17 = smov 16  }
  0x71   : > { %1058 = vmatprep.subr.bf16.mxu0 %v1376_v0  ;;  %s1391_s24 = smov 24   ;;  %s995_s26 = sshll.u32 %s1592_s12, 3 }
  0x72   : > { %p1747_p0 = scmp.ne.s32.totalorder %s1742_s23, 0 }
  0x73   : > { %1049 = vmatmul.mubr.msk.bf16.vlgmr.msra.gmra.mrb[0].mxu0 %vm294_vm1, %v270_v3 }
  0x74   : > { %1060 = vmatprep.mubr.msk.bf16.mxu0 %vm1377_vm0, %v1376_v0 }
 0x146   : > { %v332_v5 = vpop.f32.mrb[0].mxu0 }
 0x147   : > { %v333_v6 = vadd.f32 %v996_v4, %v332_v5  ;;  %v1050_v7 = vpop.f32.mrb[1].mxu0 }
 0x148   : > { %v335_v8 = vpop.f32.mrb[2].mxu0 }
 0x149   : > { %v338_v9 = vmul.f32 0.17677669, %v333_v6  ;;  %v1618_v10 = vpack.c.bf16 %v333_v6, %v333_v6  ;;  %v1051_v11 = vpop.f32.mrb[3].mxu0 }
 0x14b   : > { %v339_v12 = vpack.c.bf16 %v338_v9, %v338_v9  ;;  %342 = vrot.lane.b32.xlu0 %v1618_v10, %s1378_s8 }
 0x14d   : > { %456 = vrot.lane.b32.xlu1 %v339_v12, %s1379_s10 }
 0x14f   : > { %458 = vrot.lane.b32.xlu0 %v1618_v10, %s1380_s11  ;;  %s1016_s11 = sshll.u32 %s1444_s22, 7  ;;  %s882_s22 = scalar_lea.sflag [#allocation5], %s1592_s12 }
 0x151   : > { %577 = vrot.lane.b32.xlu1 %v1618_v10, %s1381_s28  ;;  %s268_s28 = scalar_lea.vmem [#allocation9], %s995_s26 }
 0x153   : > { %575 = vrot.lane.b32.xlu0 %v339_v12, %s1382_s7  ;;  %s895_s7 = sshll.u32 %s268_s28, 4  ;;  %s1685_s7 = int_to_ptr.vmem [resolvable:$true] %s895_s7 }
 0x155   : > { %696 = vrot.lane.b32.xlu1 %v1618_v10, %s1383_s6 }
 0x157   : > { %694 = vrot.lane.b32.xlu0 %v339_v12, %s1384_s30 }
 0x1bd   : > { %v343_v13 = vpop.permute.xlu0 %342 }
 0x1be   : > { %v349_v14 = vsel %vm344_vm2, %v343_v13, 0 }
 0x1bf   : > { %1053 = vmatpush3.bf16.xpose.msra.mxu1 %v349_v14  ;;  %v457_v16 = vpop.permute.xlu1 %456 }
 0x1c0   : > { %1064 = vmatprep.subr.bf16.mxu1 %v1376_v0 }
 0x1c1   : > { %v459_v15 = vpop.permute.xlu0 %458 }
 0x1c2   : > { %v464_v17 = vsel %vm344_vm2, %v459_v15, 0 }
 0x1c3   : > { %v578_v18 = vpop.permute.xlu1 %577 }
 0x1c4   : > { %v583_v19 = vsel %vm344_vm2, %v578_v18, 0 }
 0x1c5   : > { %v576_v21 = vpop.permute.xlu0 %575 }
 0x1c6   : > { %1055 = vmatmul.mubr.msk.bf16.vlgmr.msra.gmra.mrb[0].mxu1 %vm344_vm2, %v339_v12 }
 0x1c7   : > { %1065 = vmatpush3.bf16.xpose.msra.mxu1 %v464_v17  ;;  %1066 = vmatprep.mubr.msk.bf16.mxu1 %vm1377_vm0, %v1376_v0  ;;  %v697_v20 = vpop.permute.xlu1 %696 }
 0x1c8   : > { %1076 = vmatprep.subr.bf16.mxu1 %v1376_v0  ;;  %v702_v22 = vsel %vm344_vm2, %v697_v20, 0 }
 0x1c9   : > { %v695_v23 = vpop.permute.xlu0 %694 }
 0x1ce   : > { %1067 = vmatmul.mubr.msk.bf16.vlgmr.msra.gmra.mrb[4].mxu1 %vm344_vm2, %v457_v16 }
 0x1cf   : > { %1077 = vmatpush3.bf16.xpose.msra.mxu1 %v583_v19  ;;  %1078 = vmatprep.mubr.msk.bf16.mxu1 %vm1377_vm0, %v1376_v0 }
 0x1d0   : > { %1088 = vmatprep.subr.bf16.mxu1 %v1376_v0 }
 0x1d6   : > { %1079 = vmatmul.mubr.msk.bf16.vlgmr.msra.gmra.mrb[8].mxu1 %vm344_vm2, %v576_v21 }
 0x1d7   : > { %1089 = vmatpush3.bf16.xpose.msra.mxu1 %v702_v22  ;;  %1090 = vmatprep.mubr.msk.bf16.mxu1 %vm1377_vm0, %v1376_v0 }
 0x1d8   : > { %1100 = vmatprep.subr.bf16.mxu1 %v1376_v0 }
 0x1de   : > { %1091 = vmatmul.mubr.msk.bf16.vlgmr.msra.gmra.mrb[12].mxu1 %vm344_vm2, %v695_v23 }
 0x1df   : > { %1104 = vmatprep.mubr.msk.bf16.mxu1 %vm1377_vm0, %v1376_v0 }
 0x299   : > { %v385_v24 = vpop.f32.mrb[0].mxu1 }
 0x29a   : > { %v1056_v25 = vpop.f32.mrb[1].mxu1  ;;  %v391_v26 = vsel %vm344_vm2, %v385_v24, -inf }
 0x29b   : > { %392 = vmax.xlane.f32.xlu1 %v391_v26  ;;  %v388_v27 = vpop.f32.mrb[2].mxu1 }
 0x29c   : > { %v1057_v28 = vpop.f32.mrb[3].mxu1 }
 0x2a1   : > { %v500_v29 = vpop.f32.mrb[4].mxu1 }
 0x2a2   : > { %v1068_v30 = vpop.f32.mrb[5].mxu1  ;;  %v506_v31 = vsel %vm344_vm2, %v500_v29, -inf }
 0x2a3   : > { %507 = vmax.xlane.f32.xlu0 %v506_v31  ;;  %v503_v32 = vpop.f32.mrb[6].mxu1 }
 0x2a4   : > { %v1069_v33 = vpop.f32.mrb[7].mxu1 }
 0x2a9   : > { %v619_v34 = vpop.f32.mrb[8].mxu1 }
 0x2aa   : > { %v1080_v35 = vpop.f32.mrb[9].mxu1  ;;  %v625_v36 = vsel %vm344_vm2, %v619_v34, -inf }
 0x2ab   : > { %626 = vmax.xlane.f32.xlu0 %v625_v36  ;;  %v622_v37 = vpop.f32.mrb[10].mxu1  ;;  %v1195_v35 = vld [vmem:[#allocation8] sm:$0xff]   ;;  %v1196_v36 = vld [vmem:[#allocation8 + $0x8] sm:$0xff]  }
 0x2ac   : > { %v1081_v38 = vpop.f32.mrb[11].mxu1  ;;  %1101 = vmatpush3.bf16.msra.mxu1 %v1195_v35 }
 0x2ad   : > { %1102 = vmatprep.subr.bf16.mxu1 %v1376_v0 }
 0x2b0   : > { %1103 = vmatpush3.bf16.msra.mxu1 %v1196_v36 }
 0x2b1   : > { %v738_v39 = vpop.f32.mrb[12].mxu1 }
 0x2b2   : > { %v1092_v40 = vpop.f32.mrb[13].mxu1  ;;  %v744_v41 = vsel %vm344_vm2, %v738_v39, -inf }
 0x2b3   : > { %745 = vmax.xlane.f32.xlu1 %v744_v41  ;;  %v741_v42 = vpop.f32.mrb[14].mxu1 }
 0x2b4   : > { %v1093_v43 = vpop.f32.mrb[15].mxu1 }
 0x328   : > { %v393_v44 = vpop.xlane.xlu1 %392 }
 0x329   : > { %v394_v45 = vsub.f32 %v385_v24, %v393_v44 }
 0x32b   : > { %v395_v46 = vmul.f32 1.442695, %v394_v45 }
 0x32d   : > { %1197 = vpow2.f32 %v395_v46 }
 0x330   : > { %v508_v47 = vpop.xlane.xlu0 %507 }
 0x331   : > { %v509_v48 = vsub.f32 %v500_v29, %v508_v47 }
 0x333   : > { %v510_v49 = vmul.f32 1.442695, %v509_v48 }
 0x335   : > { %1199 = vpow2.f32 %v510_v49 }
 0x337   : > { %v1198_v50 = vpop.eup %1197 }
 0x338   : > { %v627_v51 = vpop.xlane.xlu0 %626  ;;  %v397_v52 = vsel %vm344_vm2, %v1198_v50, 0.0 }
 0x339   : > { %v628_v53 = vsub.f32 %v619_v34, %v627_v51  ;;  %398 = vadd.xlane.f32.xlu0 %v397_v52 }
 0x33b   : > { %v629_v54 = vmul.f32 1.442695, %v628_v53 }
 0x33d   : > { %1201 = vpow2.f32 %v629_v54 }
 0x33f   : > { %v1200_v55 = vpop.eup %1199 }
 0x340   : > { %v512_v56 = vsel %vm344_vm2, %v1200_v55, 0.0  ;;  %v746_v59 = vpop.xlane.xlu1 %745 }
 0x341   : > { %513 = vadd.xlane.f32.xlu1 %v512_v56  ;;  %v747_v60 = vsub.f32 %v738_v39, %v746_v59 }
 0x343   : > { %v748_v61 = vmul.f32 1.442695, %v747_v60 }
 0x345   : > { %1203 = vpow2.f32 %v748_v61 }
 0x347   : > { %v1202_v57 = vpop.eup %1201 }
 0x348   : > { %v631_v58 = vsel %vm344_vm2, %v1202_v57, 0.0 }
 0x349   : > { %632 = vadd.xlane.f32.xlu0 %v631_v58 }
 0x34f   : > { %v1204_v62 = vpop.eup %1203 }
 0x350   : > { %v750_v63 = vsel %vm344_vm2, %v1204_v62, 0.0 }
 0x352   : > { %518 = vrot.lane.b32.xlu1 %v1618_v10, %s1385_s15  ;;  %s1683_s15 = scalar_lea.hbm %s1733_s5, %s1016_s11 }
 0x35f   : > { %403 = vrot.lane.b32.xlu0 %v1618_v10, %s1386_s16  ;;  %s1299_s16 = scalar_lea.vmem %s1685_s7, 128 }
 0x360   : > { %p1300_p8 = scmp.ne.s32.totalorder %s1685_s7, %s1299_s16 }
 0x362   : > { %p1301_p1 = pnand %p1300_p8, %p1747_p0 }
 0x363   : > { %756 = vrot.lane.b32.xlu0 %v1618_v10, %s1387_s9  ;;  %s1392_s9 = smov [#allocation9]  }
 0x364   : > { %p1302_p3 = pneg %p1301_p1 }
 0x376   : > { %751 = vadd.xlane.f32.xlu1 %v750_v63 }
 0x387   : > { %637 = vrot.lane.b32.xlu1 %v1618_v10, %s1388_s13  ;;  %s1303_s13 = sshll.u32 %s1392_s9, 4  ;;  %s1304_s13 = int_to_ptr.vmem [resolvable:$false] %s1303_s13 }
 0x388   : > { %p1306_p7 = scmp.lt.s32.totalorder %s1685_s7, %s1304_s13 }
 0x3c6   : > { %v399_v1 = vpop.xlane.xlu0 %398 }
 0x3c7   : > { %1205 = vrcp.f32 %v399_v1 }
 0x3ce   : > { %v514_v2 = vpop.xlane.xlu1 %513 }
 0x3cf   : > { %1207 = vrcp.f32 %v514_v2 }
 0x3d1   : > { %v1206_v3 = vpop.eup %1205 }
 0x3d2   : > { %v401_v5 = vmul.f32 %v1206_v3, %v1198_v50  ;;  %v519_v8 = vpop.permute.xlu1 %518  ;;  %v1011_v50 = vld [vmem:[%s1732_s4] ss:$0 sm:$0xff] }
 0x3d3   : > { %v524_v12 = vsel %vm408_vm3, %v519_v8, 0 }
 0x3d4   : > { %v402_v9 = vpack.c.bf16 %v401_v5, %v401_v5 }
 0x3d6   : > { %v633_v4 = vpop.xlane.xlu0 %632 }
 0x3d7   : > { %1209 = vrcp.f32 %v633_v4 }
 0x3d9   : > { %v1208_v11 = vpop.eup %1207 }
 0x3da   : > { %v404_v6 = vpop.permute.xlu0 %403  ;;  %v516_v10 = vmul.f32 %v1208_v11, %v1200_v55 }
 0x3db   : > { %v410_v7 = vsel %vm408_vm3, %v404_v6, 0 }
 0x3dc   : > { %1059 = vmatpush3.bf16.msra.mxu0 %v410_v7  ;;  %v517_v13 = vpack.c.bf16 %v516_v10, %v516_v10 }
 0x3dd   : > { %1070 = vmatprep.subr.bf16.mxu0 %v1376_v0 }
 0x3de   : > { %v757_v19 = vpop.permute.xlu0 %756 }
 0x3df   : > { %1061 = vmatmul.mubr.msk.bf16.vlgmr.msra.gmra.mrb[4].mxu0 %vm344_vm2, %v402_v9  ;;  %v762_v21 = vsel %vm408_vm3, %v757_v19, 0 }
 0x3e0   : > { %1071 = vmatpush3.bf16.msra.mxu0 %v524_v12  ;;  %1072 = vmatprep.mubr.msk.bf16.mxu0 %vm1377_vm0, %v1376_v0 }
 0x3e1   : > { %1082 = vmatprep.subr.bf16.mxu0 %v1376_v0  ;;  %v1210_v14 = vpop.eup %1209 }
 0x3e2   : > { %v635_v16 = vmul.f32 %v1210_v14, %v1202_v57 }
 0x3e4   : > { %v636_v20 = vpack.c.bf16 %v635_v16, %v635_v16 }
 0x3e7   : > { %1073 = vmatmul.mubr.msk.bf16.vlgmr.msra.gmra.mrb[8].mxu0 %vm344_vm2, %v517_v13 }
 0x3e8   : > { %1084 = vmatprep.mubr.msk.bf16.mxu0 %vm1377_vm0, %v1376_v0 }
 0x403   : > { %v752_v15 = vpop.xlane.xlu1 %751 }
 0x404   : > { %1211 = vrcp.f32 %v752_v15 }
 0x407   : > { %v638_v17 = vpop.permute.xlu1 %637 }
 0x408   : > { %v643_v18 = vsel %vm408_vm3, %v638_v17, 0 }
 0x409   : > { %1083 = vmatpush3.bf16.msra.mxu0 %v643_v18 }
 0x40a   : > { %1094 = vmatprep.subr.bf16.mxu0 %v1376_v0 }
 0x40c   : > { %1085 = vmatmul.mubr.msk.bf16.vlgmr.msra.gmra.mrb[12].mxu0 %vm344_vm2, %v636_v20 }
 0x40d   : > { %1095 = vmatpush3.bf16.msra.mxu0 %v762_v21  ;;  %1096 = vmatprep.mubr.msk.bf16.mxu0 %vm1377_vm0, %v1376_v0 }
 0x40e   : > { %v1212_v22 = vpop.eup %1211 }
 0x40f   : > { %v754_v23 = vmul.f32 %v1212_v22, %v1204_v62 }
 0x411   : > { %v755_v24 = vpack.c.bf16 %v754_v23, %v754_v23 }
 0x414   : > { %1097 = vmatmul.mubr.msk.bf16.vlgmr.msra.gmra.mrb[16].mxu0 %vm344_vm2, %v755_v24 }
 0x4b2   : > { %v446_v25 = vpop.f32.mrb[4].mxu0 }
 0x4b3   : > { %v452_v26 = vpack.c.bf16 %v446_v25, %v446_v25  ;;  %v1062_v27 = vpop.f32.mrb[5].mxu0 }
 0x4b4   : > { %v449_v28 = vpop.f32.mrb[6].mxu0 }
 0x4b5   : > { %454 = vst.msk [vmem:[#allocation2] sm:$0xf] %vm453_vm4, %v452_v26  ;;  %v1063_v29 = vpop.f32.mrb[7].mxu0 }
 0x4ba   : > { %v560_v30 = vpop.f32.mrb[8].mxu0 }
 0x4bb   : > { %v1019_v31 = vpack.c.bf16 %v560_v30, %v560_v30  ;;  %v1074_v32 = vpop.f32.mrb[9].mxu0 }
 0x4bc   : > { %v563_v33 = vpop.f32.mrb[10].mxu0 }
 0x4bd   : > { %570 = vrot.lane.b32.xlu1 %v1019_v31, %s1389_s29  ;;  %v1075_v34 = vpop.f32.mrb[11].mxu0  ;;  %s1305_s29 = scalar_lea.vmem %s1304_s13, 256 }
 0x4be   : > { %p1307_p9 = scmp.lt.s32.totalorder %s1305_s29, %s1299_s16 }
 0x4c0   : > { %p1308_p12 = por %p1307_p9, %p1306_p7 }
 0x4c2   : > { %p1309_p2 = pnand %p1308_p12, %p1302_p3 }
 0x4df   : > { %v679_v37 = vpop.f32.mrb[12].mxu0 }
 0x4e0   : > { %v1020_v38 = vpack.c.bf16 %v679_v37, %v679_v37  ;;  %v1086_v39 = vpop.f32.mrb[13].mxu0 }
 0x4e1   : > { %v682_v40 = vpop.f32.mrb[14].mxu0 }
 0x4e2   : > { %689 = vrot.lane.b32.xlu0 %v1020_v38, %s1390_s17  ;;  %v1087_v41 = vpop.f32.mrb[15].mxu0 }
 0x4e7   : > { %v798_v42 = vpop.f32.mrb[16].mxu0 }
 0x4e8   : > { %v1021_v43 = vpack.c.bf16 %v798_v42, %v798_v42  ;;  %v1098_v44 = vpop.f32.mrb[17].mxu0 }
 0x4e9   : > { %v801_v45 = vpop.f32.mrb[18].mxu0 }
 0x4ea   : > { %808 = vrot.lane.b32.xlu1 %v1021_v43, %s1391_s24  ;;  %v1099_v46 = vpop.f32.mrb[19].mxu0 }
 0x52f   : > { %v571_v47 = vpop.permute.xlu1 %570 }
 0x530   : > { %574 = vst.msk [vmem:[#allocation2] sm:$0xf] %vm573_vm5, %v571_v47 }
 0x554   : > { %v690_v0 = vpop.permute.xlu0 %689 }
 0x555   : > { %693 = vst.msk [vmem:[#allocation2] sm:$0xf] %vm692_vm6, %v690_v0 }
 0x55c   : > { %v809_v48 = vpop.permute.xlu1 %808 }
 0x55d   : > { %812 = vst.msk [vmem:[#allocation2] sm:$0xf] %vm811_vm7, %v809_v48 }
 0x564   : > { %v813_v49 = vld [vmem:[#allocation2] sm:$0xf] }
 0x565   : > { %1105 = vmatmul.mubr.msk.bf16.vlgmr.msra.gmra.mrb[16].mxu1 %vm294_vm1, %v813_v49 }
 0x638   : > { %v874_v51 = vpop.f32.mrb[16].mxu1 }
 0x639   : > { %v875_v52 = vadd.f32 %v1011_v50, %v874_v51  ;;  %v1106_v53 = vpop.f32.mrb[17].mxu1 }
 0x63a   : > { %v877_v54 = vpop.f32.mrb[18].mxu1 }
 0x63b   : > { %v1107_v55 = vpop.f32.mrb[19].mxu1  ;;  %880 = vst.msk [vmem:[%s268_s28] sm:$0xff] %vm294_vm1, %v875_v52 }
 0x63c   : > { %1312 = shalt.err (!%p1309_p2)
}
 0x63d   : > { %s1313_s12 = scalar_lea.hbm %s1683_s15, 128  ;;  %s1317_s26 = scalar_lea.hbm %s1733_s5, 256 }
 0x63e   : > { %p1314_p13 = scmp.ne.s32.totalorder %s1683_s15, %s1313_s12  ;;  %p1318_p4 = scmp.lt.u32.totalorder %s1683_s15, %s1733_s5 }
 0x63f   : > { %p1319_p5 = scmp.lt.u32.totalorder %s1317_s26, %s1313_s12  ;;  %p1321_p8 = scmp.lt.u32.totalorder %s1313_s12, %s1683_s15 }
 0x640   : > { %p1315_p6 = pnand %p1314_p13, %p1747_p0 }
 0x641   : > { %p1320_p11 = por %p1319_p5, %p1318_p4 }
 0x642   : > { %p1316_p10 = pneg %p1315_p6 }
 0x643   : > { %p1322_p1 = por %p1321_p8, %p1320_p11 }
 0x645   : > { %p1323_p3 = pnand %p1322_p1, %p1316_p10 }
 0x647   : > { %1326 = shalt.err (!%p1323_p3)
}
 0x648   : > { %1118 = dma.vmem_to_hbm [thread:$0]  (%p1747_p0), %s1685_s7, 128, %s1683_s15, %s882_s22  }
 0x649 PF: > { %s907_s11 = sand.u32 1, %s1357_s18   ;;  %p1748_p7 = scmp.ne.s32.totalorder %s1738_s25, 0 }
 0x64a   : > { %p1749_p9 = scmp.ge.s32.totalorder %s1369_s21, 2  ;;  %s908_s28 = scalar_lea.sflag [#allocation5], %s907_s11 }
 0x64c   : > { %p1132_p12 = pnand %p1749_p9, %p1748_p7 }
 0x64e   : > { %1352 = dma.done.wait (!%p1132_p12), %s908_s28, 128  }
 0x64f   : > { %1354 = vsyncadd (!%p1132_p12), %s908_s28, 4294967168  ;;  %p19_p2 = scmp.ge.s32.totalorder %s1533_s14, 4   ;;  %s1750_s18 = smov %s1361_s19 }
 0x650   : > { %s1751_s19 = smov %s1365_s20  ;;  %s1752_s20 = smov %s1549_s27 }
 0x651   : > { %s1753_s21 = smov %s1533_s14  ;;  %21 = sbr.rel (!%p19_p2) target bundleno = 6 (0x6), region = 93 }
 0x658   :  { %913 = vsyncpa [#allocation4], 1 }
 0x659   :  { %915 = vsyncpa [#allocation4 + $0x1], 1 }
 0x65a   :  { %916 = vsyncpa [#allocation7], 1 }
 0x65b   :  { %917 = vsyncpa [#allocation5], 1 }
 0x65c   :  { %919 = vsyncpa [#allocation5 + $0x1], 1 }

</bundles_post_ra>
